<compile_context>
chip_gen: v5e
topology: v5e:2x2
jax: 0.10.0
libtpu: 0.0.40
codegen_flags: <defaults>
</compile_context>

<pallas_src>
import math

import jax
import jax.numpy as jnp
from jax.experimental import pallas as pl
from jax.experimental.pallas import tpu as pltpu


def _message_filter_kernel(x_ref, w1_ref, b1_ref, w2_ref, b2_ref, o_ref):
    # In-kernel cast to the MXU dtype (zero extra HBM traffic vs wrapper cast).
    x = x_ref[...].astype(w1_ref.dtype)
    # Linear1 + Tanh: MXU matmul with f32 accumulation, tanh on the EUP.
    h = jnp.dot(x, w1_ref[...], preferred_element_type=jnp.float32)
    h = jnp.tanh(h + b1_ref[...])                        # b1 broadcasts over rows
    # Linear2.
    y = jnp.dot(h.astype(w2_ref.dtype), w2_ref[...],
                preferred_element_type=jnp.float32)
    y = y + b2_ref[...]
    # sigmoid(y) == 0.5 * (1 + tanh(0.5*y)) -- single EUP op per element.
    o_ref[...] = (0.5 * (1.0 + jnp.tanh(0.5 * y))).astype(o_ref.dtype)


def _round_up(x, m):
    return ((x + m - 1) // m) * m


def _default_packed_width():
    """256-wide operands on v6e/v7x (native MXU tile); 128 on v5e / unknown."""
    try:
        kind = jax.devices()[0].device_kind.lower()
    except Exception:
        return 128
    return 128 if "v5" in kind else 256


def _choose_pack(f_in, hidden, lane, max_pack=16):
    """Smallest replication factor making both packed widths multiples of `lane`."""
    fa = lane // math.gcd(lane, f_in)
    fb = lane // math.gcd(lane, hidden)
    p = math.lcm(fa, fb)
    # Fallback keeps correctness but is lane-sparse (masked stores): a perf
    # cliff, not a math error.
    return p if p <= max_pack else 1


def _pack_params(w1, b1, w2, b2, pack, param_dtype):
    """Block-diagonal replication of the weights; tiled biases (kept in f32)."""
    eye = jnp.eye(pack, dtype=jnp.float32)
    w1_blk = jnp.kron(eye, w1.astype(jnp.float32)).astype(param_dtype)
    w2_blk = jnp.kron(eye, w2.astype(jnp.float32)).astype(param_dtype)
    b1_blk = jnp.tile(b1.reshape(1, -1).astype(jnp.float32), (1, pack))
    b2_blk = jnp.tile(b2.reshape(1, -1).astype(jnp.float32), (1, pack))
    return w1_blk, b1_blk, w2_blk, b2_blk


def _reference(x, w1, b1, w2, b2):
    return jax.nn.sigmoid(jnp.tanh(x @ w1 + b1.reshape(1, -1)) @ w2
                          + b2.reshape(1, -1))


def message_filter_forward(x, w1, b1, w2, b2, *, block_rows=2048,
                           param_dtype=None, out_dtype=None, packed_width=None,
                           use_pallas=None, min_pallas_rows=64):
    """Fused MLP-filter forward: sigmoid(tanh(x @ w1 + b1) @ w2 + b2).

    x : (N, input_features)
    w1: (input_features, hidden_dim), b1: (hidden_dim,) or (1, hidden_dim)
    w2: (hidden_dim, hidden_dim),     b2: (hidden_dim,) or (1, hidden_dim)
    param_dtype: MXU operand dtype (cast in-kernel; accumulation stays f32).
    out_dtype  : output dtype (bf16 is safe for a sigmoid output, halves writes).
    """
    n, f_in = x.shape
    f_in_w, hidden = w1.shape
    assert f_in == f_in_w, "w1 must be (input_features, hidden_dim)"
    if param_dtype is None:
        param_dtype = x.dtype
    if out_dtype is None:
        out_dtype = x.dtype
    if packed_width is None:
        packed_width = _default_packed_width()

    pack = _choose_pack(f_in, hidden, packed_width)
    in_w = pack * f_in
    out_w = pack * hidden
    rows_packed = pl.cdiv(n, pack)

    # Tiny batches: a standalone pallas_call is pure launch + DMA fixed cost;
    # XLA fuses an 8x32 MLP essentially for free.
    if use_pallas is None:
        use_pallas = rows_packed >= min_pallas_rows
    if not use_pallas:
        y = _reference(x.astype(jnp.float32), w1.astype(jnp.float32),
                       b1.astype(jnp.float32), w2.astype(jnp.float32),
                       b2.astype(jnp.float32))
        return y.astype(out_dtype)

    # Pad x by at most pack-1 rows so it reshapes into a lane-dense slab.
    pad_rows = rows_packed * pack - n
    x_p = jnp.pad(x, ((0, pad_rows), (0, 0))) if pad_rows else x
    x_packed = x_p.reshape(rows_packed, in_w)            # native dtype, no cast
    w1_b, b1_b, w2_b, b2_b = _pack_params(w1, b1, w2, b2, pack, param_dtype)

    # Row tile in packed rows: large (kernel is HBM-bound), multiple of 8
    # sublanes.  Ragged last block is clipped by Pallas.
    block_n = min(_round_up(block_rows, 8), _round_up(rows_packed, 8))
    steps = pl.cdiv(rows_packed, block_n)
    # v7x has 2 TensorCores; an odd multi-step grid leaves one idle for a step.
    if steps > 1 and steps % 2 == 1:
        block_n = max(8, _round_up(pl.cdiv(rows_packed, steps + 1), 8))
        steps = pl.cdiv(rows_packed, block_n)

    def _isz(dt):
        return jnp.dtype(dt).itemsize

    vmem_est = (2 * block_n * in_w * _isz(x.dtype)            # x double buffer
                + 2 * block_n * out_w * _isz(out_dtype)       # out double buffer
                + 2 * ((in_w + out_w) * out_w * _isz(param_dtype)
                       + 2 * out_w * 4))                      # resident params
    cp_kwargs = dict(dimension_semantics=("parallel",))
    if vmem_est > (12 << 20):   # only override the conservative default if needed
        cp_kwargs["vmem_limit_bytes"] = min(int(vmem_est * 3 // 2), 48 << 20)

    out_packed = pl.pallas_call(
        _message_filter_kernel,
        out_shape=jax.ShapeDtypeStruct((rows_packed, out_w), out_dtype),
        grid_spec=pltpu.PrefetchScalarGridSpec(
            num_scalar_prefetch=0,
            grid=(steps,),
            in_specs=[
                pl.BlockSpec((block_n, in_w), lambda i: (i, 0)),   # x row tile
                pl.BlockSpec((in_w, out_w), lambda i: (0, 0)),     # w1 (resident)
                pl.BlockSpec((1, out_w), lambda i: (0, 0)),        # b1
                pl.BlockSpec((out_w, out_w), lambda i: (0, 0)),    # w2 (resident)
                pl.BlockSpec((1, out_w), lambda i: (0, 0)),        # b2
            ],
            out_specs=pl.BlockSpec((block_n, out_w), lambda i: (i, 0)),
        ),
        compiler_params=pltpu.CompilerParams(**cp_kwargs),
    )(x_packed, w1_b, b1_b, w2_b, b2_b)

    out = out_packed.reshape(rows_packed * pack, hidden)
    return out[:n] if pad_rows else out


def init_message_filter_params(key, input_features, hidden_dim, dtype=jnp.float32):
    """Deterministic synthetic init matching nn.Linear shapes (stored transposed)."""
    k1, k2, k3, k4 = jax.random.split(key, 4)
    lim1 = 1.0 / (input_features ** 0.5)
    lim2 = 1.0 / (hidden_dim ** 0.5)
    w1 = jax.random.uniform(k1, (input_features, hidden_dim), dtype, -lim1, lim1)
    b1 = jax.random.uniform(k2, (1, hidden_dim), dtype, -lim1, lim1)
    w2 = jax.random.uniform(k3, (hidden_dim, hidden_dim), dtype, -lim2, lim2)
    b2 = jax.random.uniform(k4, (1, hidden_dim), dtype, -lim2, lim2)
    return w1, b1, w2, b2


if __name__ == "__main__":
    # MessageFilter(input_features=32, hidden_dim=32, filter_type='input_features')
    # forward(current_state, current_layer=0), current_state: (batch, input_features)
    batch, input_features, hidden_dim = 8, 32, 32

    key = jax.random.PRNGKey(0)
    kx, kp, kx2 = jax.random.split(key, 3)
    x = jax.random.normal(kx, (batch, input_features), dtype=jnp.float32)
    w1, b1, w2, b2 = init_message_filter_params(kp, input_features, hidden_dim)
    ref = _reference(x, w1, b1, w2, b2)

    # 1) Spec-sized problem (8x32): auto mode bypasses Pallas (launch overhead
    #    dominates), forced mode exercises the kernel at spec shape (f32 path).
    out_auto = jax.block_until_ready(message_filter_forward(x, w1, b1, w2, b2))
    assert out_auto.shape == (batch, hidden_dim)
    assert jnp.allclose(out_auto, ref, atol=1e-5, rtol=1e-5)

    out_pl = jax.block_until_ready(
        message_filter_forward(x, w1, b1, w2, b2, use_pallas=True))
    assert out_pl.shape == (batch, hidden_dim)
    assert jnp.allclose(out_pl, ref, atol=1e-5, rtol=1e-5)

    # 2) Larger batch: multi-step pipelined grid, ragged last block, even step
    #    count, f32 path (tight tolerance).
    x_big = jax.random.normal(kx2, (4100, input_features), dtype=jnp.float32)
    ref_big = _reference(x_big, w1, b1, w2, b2)
    out_big = jax.block_until_ready(
        message_filter_forward(x_big, w1, b1, w2, b2, block_rows=256))
    assert out_big.shape == (4100, hidden_dim)
    assert jnp.allclose(out_big, ref_big, atol=1e-5, rtol=1e-5)

    # 3) bf16 MXU operands (in-kernel cast, f32 accumulation), f32 I/O.
    out_bf16 = jax.block_until_ready(
        message_filter_forward(x_big, w1, b1, w2, b2, param_dtype=jnp.bfloat16))
    assert jnp.allclose(out_bf16, ref_big, atol=3e-2, rtol=3e-2)

    # 4) bf16 output (halves output HBM writes; sigmoid output is in [0, 1]).
    out_o16 = jax.block_until_ready(
        message_filter_forward(x_big, w1, b1, w2, b2, out_dtype=jnp.bfloat16))
    assert out_o16.dtype == jnp.bfloat16
    assert jnp.allclose(out_o16.astype(jnp.float32), ref_big, atol=1e-2, rtol=1e-2)

    print("KERNEL_OK")
</pallas_src>

<mosaic_0001>
module attributes {stable_mosaic.version = 11 : i64} {
  func.func @_message_filter_kernel(%arg0: i32, %arg1: memref<8x256xf32, #tpu.memory_space<vmem>>, %arg2: memref<256x256xf32, #tpu.memory_space<vmem>>, %arg3: memref<1x256xf32, #tpu.memory_space<vmem>>, %arg4: memref<256x256xf32, #tpu.memory_space<vmem>>, %arg5: memref<1x256xf32, #tpu.memory_space<vmem>>, %arg6: memref<8x256xf32, #tpu.memory_space<vmem>>) attributes {dimension_semantics = [#tpu.dimension_semantics<parallel>], iteration_bounds = array<i64: 1>, scalar_prefetch = 0 : i64, scratch_operands = 0 : i64, tpu.core_type = #tpu.core_type<tc>, window_params = [{transform_indices = @transform_0, window_bounds = array<i64: 8, 256>}, {pipeline_mode = #tpu.pipeline_mode<synchronous>, transform_indices = @transform_1, window_bounds = array<i64: 256, 256>}, {pipeline_mode = #tpu.pipeline_mode<synchronous>, transform_indices = @transform_2, window_bounds = array<i64: 1, 256>}, {pipeline_mode = #tpu.pipeline_mode<synchronous>, transform_indices = @transform_3, window_bounds = array<i64: 256, 256>}, {pipeline_mode = #tpu.pipeline_mode<synchronous>, transform_indices = @transform_4, window_bounds = array<i64: 1, 256>}, {transform_indices = @transform_5, window_bounds = array<i64: 8, 256>}]} {
    %c0 = arith.constant 0 : index
    %c0_0 = arith.constant 0 : index
    %0 = vector.load %arg1[%c0, %c0_0] : memref<8x256xf32, #tpu.memory_space<vmem>>, vector<8x256xf32>
    %c0_1 = arith.constant 0 : index
    %c0_2 = arith.constant 0 : index
    %1 = vector.load %arg2[%c0_1, %c0_2] : memref<256x256xf32, #tpu.memory_space<vmem>>, vector<256x256xf32>
    %cst = arith.constant dense<0.000000e+00> : vector<8x256xf32>
    %2 = tpu.matmul %0, %1, %cst {dimension_numbers = #tpu.dot_dimension_numbers<[1], [0], [0], [1], [0, 0, 1, 1], [], []>} : vector<8x256xf32>, vector<256x256xf32>, vector<8x256xf32> -> vector<8x256xf32>
    %c0_3 = arith.constant 0 : index
    %c0_4 = arith.constant 0 : index
    %3 = vector.load %arg3[%c0_3, %c0_4] : memref<1x256xf32, #tpu.memory_space<vmem>>, vector<1x256xf32>
    %4 = vector.broadcast %3 : vector<1x256xf32> to vector<8x256xf32>
    %5 = arith.addf %2, %4 : vector<8x256xf32>
    %6 = math.tanh %5 : vector<8x256xf32>
    %c0_5 = arith.constant 0 : index
    %c0_6 = arith.constant 0 : index
    %7 = vector.load %arg4[%c0_5, %c0_6] : memref<256x256xf32, #tpu.memory_space<vmem>>, vector<256x256xf32>
    %cst_7 = arith.constant dense<0.000000e+00> : vector<8x256xf32>
    %8 = tpu.matmul %6, %7, %cst_7 {dimension_numbers = #tpu.dot_dimension_numbers<[1], [0], [0], [1], [0, 0, 1, 1], [], []>} : vector<8x256xf32>, vector<256x256xf32>, vector<8x256xf32> -> vector<8x256xf32>
    %c0_8 = arith.constant 0 : index
    %c0_9 = arith.constant 0 : index
    %9 = vector.load %arg5[%c0_8, %c0_9] : memref<1x256xf32, #tpu.memory_space<vmem>>, vector<1x256xf32>
    %10 = vector.broadcast %9 : vector<1x256xf32> to vector<8x256xf32>
    %11 = arith.addf %8, %10 : vector<8x256xf32>
    %cst_10 = arith.constant 5.000000e-01 : f32
    %12 = vector.broadcast %cst_10 : f32 to vector<8x256xf32>
    %13 = arith.mulf %12, %11 : vector<8x256xf32>
    %14 = math.tanh %13 : vector<8x256xf32>
    %cst_11 = arith.constant 1.000000e+00 : f32
    %15 = vector.broadcast %cst_11 : f32 to vector<8x256xf32>
    %16 = arith.addf %15, %14 : vector<8x256xf32>
    %cst_12 = arith.constant 5.000000e-01 : f32
    %17 = vector.broadcast %cst_12 : f32 to vector<8x256xf32>
    %18 = arith.mulf %17, %16 : vector<8x256xf32>
    %c0_13 = arith.constant 0 : index
    %c0_14 = arith.constant 0 : index
    %19 = vector.load %arg6[%c0_13, %c0_14] : memref<8x256xf32, #tpu.memory_space<vmem>>, vector<8x256xf32>
    tpu.vector_store %arg6[%c0_13, %c0_14], %18 {strides = array<i32>} : memref<8x256xf32, #tpu.memory_space<vmem>>, vector<8x256xf32>,
    return
  }
  func.func @transform_0(%arg0: i32) -> (i32, i32) {
    %c0_i32 = arith.constant 0 : i32
    %c0_i32_0 = arith.constant 0 : i32
    return %arg0, %c0_i32 : i32, i32
  }
  func.func @transform_1(%arg0: i32) -> (i32, i32) {
    %c0_i32 = arith.constant 0 : i32
    %c0_i32_0 = arith.constant 0 : i32
    %c0_i32_1 = arith.constant 0 : i32
    return %c0_i32, %c0_i32_0 : i32, i32
  }
  func.func @transform_2(%arg0: i32) -> (i32, i32) {
    %c0_i32 = arith.constant 0 : i32
    %c0_i32_0 = arith.constant 0 : i32
    %c0_i32_1 = arith.constant 0 : i32
    return %c0_i32, %c0_i32_0 : i32, i32
  }
  func.func @transform_3(%arg0: i32) -> (i32, i32) {
    %c0_i32 = arith.constant 0 : i32
    %c0_i32_0 = arith.constant 0 : i32
    %c0_i32_1 = arith.constant 0 : i32
    return %c0_i32, %c0_i32_0 : i32, i32
  }
  func.func @transform_4(%arg0: i32) -> (i32, i32) {
    %c0_i32 = arith.constant 0 : i32
    %c0_i32_0 = arith.constant 0 : i32
    %c0_i32_1 = arith.constant 0 : i32
    return %c0_i32, %c0_i32_0 : i32, i32
  }
  func.func @transform_5(%arg0: i32) -> (i32, i32) {
    %c0_i32 = arith.constant 0 : i32
    %c0_i32_0 = arith.constant 0 : i32
    return %arg0, %c0_i32 : i32, i32
  }
}

</mosaic_0001>

<bundles_post_ra>
// kernel: tpu_custom_call.1
= control target key start
LH: loop header
LB: loop body
LE: loop exit
PB: predicated region body
PF: predicated region fallthrough
CT: control target
= control target key end

     0   :  { %10 = vsyncpa [#allocation3], 0  ;;  %s722_s0 = inlined_call_operand.hbm [shape: f32[1,256], index: 0, kind: input, shape index: {}]   ;;  %s723_s1 = inlined_call_operand.hbm [shape: f32[256,256], index: 1, kind: input, shape index: {}]   ;;  %s724_s2 = inlined_call_operand.hbm [shape: f32[1,256], index: 2, kind: input, shape index: {}]   ;;  %s725_s3 = inlined_call_operand.hbm [shape: f32[256,256], index: 3, kind: input, shape index: {}]   ;;  %s726_s4 = inlined_call_operand.vmem [shape: f32[1,256], index: 4, kind: input, shape index: {}]   ;;  %s727_s5 = inlined_call_operand.hbm [shape: f32[1,256], index: 5, kind: output, shape index: {}]  }
   0x1   :  { %11 = vsyncpa [#allocation6], 0 }
   0x2   :  { %12 = vsyncpa [#allocation9], 0 }
   0x3   :  { %13 = vsyncpa [#allocation4], 0  ;;  %s31_s20 = sshll.u32 %s723_s1, 4  ;;  %s32_s20 = int_to_ptr.hbm [resolvable:$true] %s31_s20 }
   0x4   :  { %17 = vsyncadd [#allocation3], 224  ;;  %s639_s21 = smov [#allocation5]   ;;  %s18_s25 = sshll.u32 %s722_s0, 4  ;;  %s19_s25 = int_to_ptr.hbm [resolvable:$true] %s18_s25 }
   0x5   :  { %s33_s22 = sshll.u32 %s639_s21, 4  ;;  %s640_s26 = smov 256   ;;  %s34_s22 = int_to_ptr.vmem [resolvable:$true] %s33_s22 }
   0x6   :  { %s641_s27 = smov 16   ;;  %s642_s28 = smov [#allocation2]  }
   0x7   :  { %39 = dma.hbm_to_vmem [thread:$0]  %s32_s20, 8192, %s34_s22, [#allocation6], %s640_s26, %s640_s26, %s641_s27  }
   0x8   :  { %s20_s29 = sshll.u32 %s642_s28, 4  ;;  %s643_s30 = smov 32   ;;  %s21_s29 = int_to_ptr.vmem [resolvable:$true] %s20_s29 }
   0x9   :  { %s644_s6 = smov 2   ;;  %s45_s8 = sshll.u32 %s724_s2, 4  ;;  %s46_s8 = int_to_ptr.hbm [resolvable:$true] %s45_s8 }
   0xa   :  { %26 = dma.hbm_to_vmem [thread:$0]  %s19_s25, 32, %s21_s29, [#allocation3], %s643_s30, %s643_s30, %s644_s6  }
   0xb   :  { %s645_s9 = smov [#allocation7]   ;;  %s55_s12 = sshll.u32 %s725_s3, 4  ;;  %s56_s12 = int_to_ptr.hbm [resolvable:$true] %s55_s12 }
   0xc   :  { %s47_s0 = sshll.u32 %s645_s9, 4  ;;  %s646_s13 = smov [#allocation8]   ;;  %s48_s0 = int_to_ptr.vmem [resolvable:$true] %s47_s0 }
   0xd   :  { %50 = dma.hbm_to_vmem [thread:$0]  %s46_s8, 32, %s48_s0, [#allocation6]  }
   0xe   :  { %s57_s14 = sshll.u32 %s646_s13, 4  ;;  %s58_s14 = int_to_ptr.vmem [resolvable:$true] %s57_s14 }
   0xf   :  { %63 = dma.hbm_to_vmem [thread:$0]  %s56_s12, 8192, %s58_s14, [#allocation9], %s640_s26, %s640_s26, %s641_s27  }
  0x10   :  { %631 = dma.done.wait [#allocation3], 256  }
  0x11   :  { %632 = vsyncadd [#allocation3], 4294967040 }
  0x12   :  { %633 = dma.done.wait [#allocation6], 8224  }
  0x13   :  { %634 = vsyncadd [#allocation6], 4294959072 }
  0x14   :  { %635 = dma.done.wait [#allocation9], 8192  }
  0x15   :  { %636 = vsyncadd [#allocation9], 4294959104  ;;  %v121_v0 = vld [vmem:[#allocation5 + $0xf8] sm:$0xff]  ;;  %v119_v1 = vld [vmem:[#allocation5 + $0xe8] sm:$0xff]  ;;  %vm430_vm0 = vcmask 1040384   ;;  %vm432_vm1 = vcmask 1041409  }
  0x16   :  { %v153_v2 = vld [vmem:[#allocation5 + $0x1f8] sm:$0xff]  ;;  %227 = vmatpush.msra.mxu2 %v121_v0  ;;  %v120_v3 = vld [vmem:[#allocation5 + $0xf0] sm:$0xff]  ;;  %v151_v4 = vld [vmem:[#allocation5 + $0x1e8] sm:$0xff]  ;;  %vm435_vm2 = vcmask 1042434   ;;  %vm438_vm3 = vcmask 1043459   ;;  %vm441_vm4 = vcmask 1044484  }
  0x17   :  { %247 = vmatpush.msra.mxu3 %v153_v2  ;;  %187 = vmatpush.msra.mxu0 %v120_v3  ;;  %v117_v5 = vld [vmem:[#allocation5 + $0xd8] sm:$0xff]  ;;  %v118_v6 = vld [vmem:[#allocation5 + $0xe0] sm:$0xff]  ;;  %v152_v7 = vld [vmem:[#allocation5 + $0x1f0] sm:$0xff]  ;;  %vm444_vm6 = vcmask 1045509   ;;  %vm447_vm7 = vcmask 1046534   ;;  %vm450_vm8 = vcmask 1046528  }
  0x18   :  { %228 = vmatpush.msra.mxu2 %v119_v1  ;;  %v149_v8 = vld [vmem:[#allocation5 + $0x1d8] sm:$0xff]  ;;  %v116_v9 = vld [vmem:[#allocation5 + $0xd0] sm:$0xff]  ;;  %v150_v10 = vld [vmem:[#allocation5 + $0x1e0] sm:$0xff]  ;;  %207 = vmatpush.msra.mxu1 %v152_v7 }
  0x19   :  { %248 = vmatpush.msra.mxu3 %v151_v4  ;;  %188 = vmatpush.msra.mxu0 %v118_v6  ;;  %v115_v11 = vld [vmem:[#allocation5 + $0xc8] sm:$0xff]  ;;  %v114_v13 = vld [vmem:[#allocation5 + $0xc0] sm:$0xff]  ;;  %v148_v14 = vld [vmem:[#allocation5 + $0x1d0] sm:$0xff] }
  0x1a   :  { %v147_v12 = vld [vmem:[#allocation5 + $0x1c8] sm:$0xff]  ;;  %229 = vmatpush.msra.mxu2 %v117_v5  ;;  %208 = vmatpush.msra.mxu1 %v150_v10  ;;  %v113_v15 = vld [vmem:[#allocation5 + $0xb8] sm:$0xff]  ;;  %v112_v17 = vld [vmem:[#allocation5 + $0xb0] sm:$0xff] }
  0x1b   :  { %249 = vmatpush.msra.mxu3 %v149_v8  ;;  %189 = vmatpush.msra.mxu0 %v116_v9  ;;  %v145_v16 = vld [vmem:[#allocation5 + $0x1b8] sm:$0xff]  ;;  %v146_v18 = vld [vmem:[#allocation5 + $0x1c0] sm:$0xff]  ;;  %v111_v19 = vld [vmem:[#allocation5 + $0xa8] sm:$0xff] }
  0x1c   :  { %230 = vmatpush.msra.mxu2 %v115_v11  ;;  %209 = vmatpush.msra.mxu1 %v148_v14  ;;  %v143_v20 = vld [vmem:[#allocation5 + $0x1a8] sm:$0xff]  ;;  %v110_v21 = vld [vmem:[#allocation5 + $0xa0] sm:$0xff]  ;;  %v144_v22 = vld [vmem:[#allocation5 + $0x1b0] sm:$0xff] }
  0x1d   :  { %250 = vmatpush.msra.mxu3 %v147_v12  ;;  %190 = vmatpush.msra.mxu0 %v114_v13  ;;  %v109_v23 = vld [vmem:[#allocation5 + $0x98] sm:$0xff]  ;;  %v108_v25 = vld [vmem:[#allocation5 + $0x90] sm:$0xff]  ;;  %v142_v26 = vld [vmem:[#allocation5 + $0x1a0] sm:$0xff] }
  0x1e   :  { %231 = vmatpush.msra.mxu2 %v113_v15  ;;  %210 = vmatpush.msra.mxu1 %v146_v18  ;;  %v141_v24 = vld [vmem:[#allocation5 + $0x198] sm:$0xff]  ;;  %v107_v27 = vld [vmem:[#allocation5 + $0x88] sm:$0xff]  ;;  %v106_v29 = vld [vmem:[#allocation5 + $0x80] sm:$0xff] }
  0x1f   :  { %251 = vmatpush.msra.mxu3 %v145_v16  ;;  %191 = vmatpush.msra.mxu0 %v112_v17  ;;  %v139_v28 = vld [vmem:[#allocation5 + $0x188] sm:$0xff]  ;;  %v140_v30 = vld [vmem:[#allocation5 + $0x190] sm:$0xff]  ;;  %v105_v31 = vld [vmem:[#allocation5 + $0x78] sm:$0xff] }
  0x20   :  { %232 = vmatpush.msra.mxu2 %v111_v19  ;;  %211 = vmatpush.msra.mxu1 %v144_v22  ;;  %v137_v32 = vld [vmem:[#allocation5 + $0x178] sm:$0xff]  ;;  %v104_v33 = vld [vmem:[#allocation5 + $0x70] sm:$0xff]  ;;  %v138_v34 = vld [vmem:[#allocation5 + $0x180] sm:$0xff] }
  0x21   :  { %252 = vmatpush.msra.mxu3 %v143_v20  ;;  %192 = vmatpush.msra.mxu0 %v110_v21  ;;  %v103_v35 = vld [vmem:[#allocation5 + $0x68] sm:$0xff]  ;;  %v102_v37 = vld [vmem:[#allocation5 + $0x60] sm:$0xff]  ;;  %v136_v38 = vld [vmem:[#allocation5 + $0x170] sm:$0xff] }
  0x22   :  { %233 = vmatpush.msra.mxu2 %v109_v23  ;;  %212 = vmatpush.msra.mxu1 %v142_v26  ;;  %v135_v36 = vld [vmem:[#allocation5 + $0x168] sm:$0xff]  ;;  %v101_v39 = vld [vmem:[#allocation5 + $0x58] sm:$0xff]  ;;  %v100_v41 = vld [vmem:[#allocation5 + $0x50] sm:$0xff] }
  0x23   :  { %253 = vmatpush.msra.mxu3 %v141_v24  ;;  %193 = vmatpush.msra.mxu0 %v108_v25  ;;  %v133_v40 = vld [vmem:[#allocation5 + $0x158] sm:$0xff]  ;;  %v134_v42 = vld [vmem:[#allocation5 + $0x160] sm:$0xff]  ;;  %v82_v43 = vld [vmem:[#allocation2] sm:$0x3] }
  0x24   :  { %234 = vmatpush.msra.mxu2 %v107_v27  ;;  %213 = vmatpush.msra.mxu1 %v140_v30  ;;  %v99_v44 = vld [vmem:[#allocation5 + $0x48] sm:$0xff]  ;;  %v83_v46 = vld [vmem:[#allocation2 + $0x2] sm:$0x3]  ;;  %v98_v47 = vld [vmem:[#allocation5 + $0x40] sm:$0xff]  ;;  %168 = vst [vmem:[#allocation1] ss:$9 sm:$0xff] %v82_v43 }
  0x25   :  { %254 = vmatpush.msra.mxu3 %v139_v28  ;;  %194 = vmatpush.msra.mxu0 %v106_v29  ;;  %v131_v45 = vld [vmem:[#allocation5 + $0x148] sm:$0xff]  ;;  %v132_v48 = vld [vmem:[#allocation5 + $0x150] sm:$0xff]  ;;  %v97_v50 = vld [vmem:[#allocation5 + $0x38] sm:$0xff]  ;;  %170 = vst [vmem:[#allocation1 + $0x1] ss:$9 sm:$0xff] %v83_v46 }
  0x26   :  { %235 = vmatpush.msra.mxu2 %v105_v31  ;;  %214 = vmatpush.msra.mxu1 %v138_v34  ;;  %v84_v49 = vld [vmem:[#allocation2 + $0x4] sm:$0x3]  ;;  %v129_v51 = vld [vmem:[#allocation5 + $0x138] sm:$0xff]  ;;  %v85_v52 = vld [vmem:[#allocation2 + $0x6] sm:$0x3] }
  0x27   :  { %255 = vmatpush.msra.mxu3 %v137_v32  ;;  %195 = vmatpush.msra.mxu0 %v104_v33  ;;  %v96_v53 = vld [vmem:[#allocation5 + $0x30] sm:$0xff]  ;;  %v130_v54 = vld [vmem:[#allocation5 + $0x140] sm:$0xff]  ;;  %v86_v55 = vld [vmem:[#allocation2 + $0x8] sm:$0x3]  ;;  %172 = vst [vmem:[#allocation1 + $0x2] ss:$9 sm:$0xff] %v84_v49 }
  0x28   :  { %236 = vmatpush.msra.mxu2 %v103_v35  ;;  %215 = vmatpush.msra.mxu1 %v136_v38  ;;  %v95_v56 = vld [vmem:[#allocation5 + $0x28] sm:$0xff]  ;;  %v87_v58 = vld [vmem:[#allocation2 + $0xa] sm:$0x3]  ;;  %v94_v59 = vld [vmem:[#allocation5 + $0x20] sm:$0xff]  ;;  %174 = vst [vmem:[#allocation1 + $0x3] ss:$9 sm:$0xff] %v85_v52 }
  0x29   :  { %256 = vmatpush.msra.mxu3 %v135_v36  ;;  %196 = vmatpush.msra.mxu0 %v102_v37  ;;  %v127_v57 = vld [vmem:[#allocation5 + $0x128] sm:$0xff]  ;;  %v128_v60 = vld [vmem:[#allocation5 + $0x130] sm:$0xff]  ;;  %v88_v61 = vld [vmem:[#allocation2 + $0xc] sm:$0x3]  ;;  %176 = vst [vmem:[#allocation1 + $0x4] ss:$9 sm:$0xff] %v86_v55 }
  0x2a   :  { %237 = vmatpush.msra.mxu2 %v101_v39  ;;  %216 = vmatpush.msra.mxu1 %v134_v42  ;;  %v93_v62 = vld [vmem:[#allocation5 + $0x18] sm:$0xff]  ;;  %178 = vst [vmem:[#allocation1 + $0x5] ss:$9 sm:$0xff] %v87_v58  ;;  %v92_v1 = vld [vmem:[#allocation5 + $0x10] sm:$0xff]  ;;  %v126_v2 = vld [vmem:[#allocation5 + $0x120] sm:$0xff] }
  0x2b   :  { %257 = vmatpush.msra.mxu3 %v133_v40  ;;  %197 = vmatpush.msra.mxu0 %v100_v41  ;;  %v125_v63 = vld [vmem:[#allocation5 + $0x118] sm:$0xff]  ;;  %v91_v3 = vld [vmem:[#allocation5 + $0x8] sm:$0xff]  ;;  %180 = vst [vmem:[#allocation1 + $0x6] ss:$9 sm:$0xff] %v88_v61  ;;  %v90_v5 = vld [vmem:[#allocation5] sm:$0xff] }
  0x2c   :  { %238 = vmatpush.msra.mxu2 %v99_v44  ;;  %217 = vmatpush.msra.mxu1 %v132_v48  ;;  %v89_v0 = vld [vmem:[#allocation2 + $0xe] sm:$0x3]  ;;  %v123_v4 = vld [vmem:[#allocation5 + $0x108] sm:$0xff]  ;;  %v124_v6 = vld [vmem:[#allocation5 + $0x110] sm:$0xff] }
  0x2d   :  { %258 = vmatpush.msra.mxu3 %v131_v45  ;;  %198 = vmatpush.msra.mxu0 %v98_v47  ;;  %182 = vst [vmem:[#allocation1 + $0x7] ss:$9 sm:$0xff] %v89_v0  ;;  %v299_v7 = vld [vmem:[#allocation8 + $0xf0] sm:$0xff]  ;;  %v300_v8 = vld [vmem:[#allocation8 + $0xf8] sm:$0xff]  ;;  %v297_v11 = vld [vmem:[#allocation8 + $0xe0] sm:$0xff] }
  0x2e   :  { %239 = vmatpush.msra.mxu2 %v97_v50  ;;  %218 = vmatpush.msra.mxu1 %v130_v54  ;;  %v122_v9 = vld [vmem:[#allocation5 + $0x100] sm:$0xff]  ;;  %v331_v12 = vld [vmem:[#allocation8 + $0x1f0] sm:$0xff]  ;;  %v298_v13 = vld [vmem:[#allocation8 + $0xe8] sm:$0xff] }
  0x2f   :  { %259 = vmatpush.msra.mxu3 %v129_v51  ;;  %199 = vmatpush.msra.mxu0 %v96_v53  ;;  %v332_v10 = vld [vmem:[#allocation8 + $0x1f8] sm:$0xff]  ;;  %v330_v14 = vld [vmem:[#allocation8 + $0x1e8] sm:$0xff]  ;;  %v295_v15 = vld [vmem:[#allocation8 + $0xd0] sm:$0xff] }
  0x30   :  { %240 = vmatpush.msra.mxu2 %v95_v56  ;;  %219 = vmatpush.msra.mxu1 %v128_v60  ;;  %v329_v18 = vld [vmem:[#allocation8 + $0x1e0] sm:$0xff]  ;;  %v296_v19 = vld [vmem:[#allocation8 + $0xd8] sm:$0xff]  ;;  %v327_v22 = vld [vmem:[#allocation8 + $0x1d0] sm:$0xff] }
  0x31   :  { %260 = vmatpush.msra.mxu3 %v127_v57  ;;  %200 = vmatpush.msra.mxu0 %v94_v59  ;;  %v328_v20 = vld [vmem:[#allocation8 + $0x1d8] sm:$0xff]  ;;  %v293_v21 = vld [vmem:[#allocation8 + $0xc0] sm:$0xff]  ;;  %v294_v23 = vld [vmem:[#allocation8 + $0xc8] sm:$0xff] }
  0x32   :  { %241 = vmatpush.msra.mxu2 %v93_v62  ;;  %220 = vmatpush.msra.mxu1 %v126_v2  ;;  %v326_v24 = vld [vmem:[#allocation8 + $0x1c8] sm:$0xff]  ;;  %v291_v25 = vld [vmem:[#allocation8 + $0xb0] sm:$0xff]  ;;  %v325_v26 = vld [vmem:[#allocation8 + $0x1c0] sm:$0xff] }
  0x33   :  { %261 = vmatpush.msra.mxu3 %v125_v63  ;;  %201 = vmatpush.msra.mxu0 %v92_v1  ;;  %v292_v27 = vld [vmem:[#allocation8 + $0xb8] sm:$0xff]  ;;  %v289_v29 = vld [vmem:[#allocation8 + $0xa0] sm:$0xff]  ;;  %v323_v30 = vld [vmem:[#allocation8 + $0x1b0] sm:$0xff] }
  0x34   :  { %242 = vmatpush.msra.mxu2 %v91_v3  ;;  %221 = vmatpush.msra.mxu1 %v124_v6  ;;  %v183_v16 = vld [vmem:[#allocation1] sm:$0xff]  ;;  %v184_v17 = vld [vmem:[#allocation1 + $0x9] sm:$0xff]  ;;  %v324_v28 = vld [vmem:[#allocation8 + $0x1b8] sm:$0xff] }
  0x35   :  { %262 = vmatpush.msra.mxu3 %v123_v4  ;;  %202 = vmatpush.msra.mxu0 %v90_v5  ;;  %v290_v31 = vld [vmem:[#allocation8 + $0xa8] sm:$0xff]  ;;  %v287_v33 = vld [vmem:[#allocation8 + $0x90] sm:$0xff]  ;;  %v321_v34 = vld [vmem:[#allocation8 + $0x1a0] sm:$0xff] }
  0x36   :  { %379 = vmatpush.msrb.mxu2 %v300_v8  ;;  %222 = vmatpush.msra.mxu1 %v122_v9  ;;  %v322_v32 = vld [vmem:[#allocation8 + $0x1a8] sm:$0xff]  ;;  %v288_v35 = vld [vmem:[#allocation8 + $0x98] sm:$0xff]  ;;  %v285_v37 = vld [vmem:[#allocation8 + $0x80] sm:$0xff] }
  0x37   :  { %339 = vmatpush.msrb.mxu0 %v299_v7  ;;  %399 = vmatpush.msrb.mxu3 %v332_v10  ;;  %v320_v36 = vld [vmem:[#allocation8 + $0x198] sm:$0xff]  ;;  %v319_v38 = vld [vmem:[#allocation8 + $0x190] sm:$0xff]  ;;  %v286_v39 = vld [vmem:[#allocation8 + $0x88] sm:$0xff] }
  0x38   :  { %359 = vmatpush.msrb.mxu1 %v331_v12  ;;  %380 = vmatpush.msrb.mxu2 %v298_v13  ;;  %v318_v40 = vld [vmem:[#allocation8 + $0x188] sm:$0xff]  ;;  %v283_v41 = vld [vmem:[#allocation8 + $0x70] sm:$0xff]  ;;  %v317_v42 = vld [vmem:[#allocation8 + $0x180] sm:$0xff] }
  0x39   :  { %340 = vmatpush.msrb.mxu0 %v297_v11  ;;  %400 = vmatpush.msrb.mxu3 %v330_v14  ;;  %v284_v43 = vld [vmem:[#allocation8 + $0x78] sm:$0xff]  ;;  %v281_v45 = vld [vmem:[#allocation8 + $0x60] sm:$0xff]  ;;  %v315_v46 = vld [vmem:[#allocation8 + $0x170] sm:$0xff] }
  0x3a   :  { %243 = vmatmul.f32.vlgmr.msra.gmra.mxu2 %v183_v16  ;;  %263 = vmatmul.f32.vlgmr.msra.gmra.mxu3 %v184_v17  ;;  %v316_v44 = vld [vmem:[#allocation8 + $0x178] sm:$0xff]  ;;  %v282_v47 = vld [vmem:[#allocation8 + $0x68] sm:$0xff]  ;;  %v279_v48 = vld [vmem:[#allocation8 + $0x50] sm:$0xff] }
  0x3b   :  { %203 = vmatmul.f32.vlgmr.msra.gmra.mxu0 %v183_v16  ;;  %223 = vmatmul.f32.vlgmr.msra.gmra.mxu1 %v184_v17  ;;  %v313_v49 = vld [vmem:[#allocation8 + $0x160] sm:$0xff]  ;;  %v280_v50 = vld [vmem:[#allocation8 + $0x58] sm:$0xff]  ;;  %v314_v51 = vld [vmem:[#allocation8 + $0x168] sm:$0xff] }
  0x3c   :  { %341 = vmatpush.msrb.mxu0 %v295_v15  ;;  %360 = vmatpush.msrb.mxu1 %v329_v18  ;;  %v277_v52 = vld [vmem:[#allocation8 + $0x40] sm:$0xff]  ;;  %v311_v53 = vld [vmem:[#allocation8 + $0x150] sm:$0xff]  ;;  %v278_v54 = vld [vmem:[#allocation8 + $0x48] sm:$0xff] }
  0x3d   :  { %381 = vmatpush.msrb.mxu2 %v296_v19  ;;  %401 = vmatpush.msrb.mxu3 %v328_v20  ;;  %v312_v55 = vld [vmem:[#allocation8 + $0x158] sm:$0xff]  ;;  %v275_v56 = vld [vmem:[#allocation8 + $0x30] sm:$0xff]  ;;  %v309_v57 = vld [vmem:[#allocation8 + $0x140] sm:$0xff] }
  0x3e   :  { %342 = vmatpush.msrb.mxu0 %v293_v21  ;;  %361 = vmatpush.msrb.mxu1 %v327_v22  ;;  %v276_v58 = vld [vmem:[#allocation8 + $0x38] sm:$0xff]  ;;  %v310_v59 = vld [vmem:[#allocation8 + $0x148] sm:$0xff]  ;;  %v273_v60 = vld [vmem:[#allocation8 + $0x20] sm:$0xff] }
  0x3f   :  { %382 = vmatpush.msrb.mxu2 %v294_v23  ;;  %402 = vmatpush.msrb.mxu3 %v326_v24  ;;  %v307_v61 = vld [vmem:[#allocation8 + $0x130] sm:$0xff]  ;;  %v274_v62 = vld [vmem:[#allocation8 + $0x28] sm:$0xff]  ;;  %v308_v63 = vld [vmem:[#allocation8 + $0x138] sm:$0xff] }
  0x40   :  { %343 = vmatpush.msrb.mxu0 %v291_v25  ;;  %362 = vmatpush.msrb.mxu1 %v325_v26  ;;  %v271_v0 = vld [vmem:[#allocation8 + $0x10] sm:$0xff]  ;;  %v305_v1 = vld [vmem:[#allocation8 + $0x120] sm:$0xff]  ;;  %v272_v2 = vld [vmem:[#allocation8 + $0x18] sm:$0xff] }
  0x41   :  { %383 = vmatpush.msrb.mxu2 %v292_v27  ;;  %403 = vmatpush.msrb.mxu3 %v324_v28  ;;  %v306_v3 = vld [vmem:[#allocation8 + $0x128] sm:$0xff]  ;;  %v269_v4 = vld [vmem:[#allocation8] sm:$0xff]  ;;  %v303_v5 = vld [vmem:[#allocation8 + $0x110] sm:$0xff] }
  0x42   :  { %344 = vmatpush.msrb.mxu0 %v289_v29  ;;  %363 = vmatpush.msrb.mxu1 %v323_v30  ;;  %v270_v6 = vld [vmem:[#allocation8 + $0x8] sm:$0xff]  ;;  %v304_v7 = vld [vmem:[#allocation8 + $0x118] sm:$0xff]  ;;  %v301_v8 = vld [vmem:[#allocation8 + $0x100] sm:$0xff] }
  0x43   :  { %384 = vmatpush.msrb.mxu2 %v290_v31  ;;  %404 = vmatpush.msrb.mxu3 %v322_v32  ;;  %v302_v9 = vld [vmem:[#allocation8 + $0x108] sm:$0xff]  ;;  %v154_v10 = vld [vmem:[#allocation7] sm:$0x3]  ;;  %v333_v23 = vld [vmem:[%s726_s4] sm:$0x3] }
  0x44   :  { %345 = vmatpush.msrb.mxu0 %v287_v33  ;;  %364 = vmatpush.msrb.mxu1 %v321_v34  ;;  %v156_v11 = vperm.slane %v154_v10, 0  ;;  %v157_v15 = vperm.slane %v154_v10, 1  ;;  %v335_v24 = vperm.slane %v333_v23, 0  ;;  %v336_v27 = vperm.slane %v333_v23, 1 }
  0x45   :  { %385 = vmatpush.msrb.mxu2 %v288_v35  ;;  %405 = vmatpush.msrb.mxu3 %v320_v36 }
  0x46   :  { %346 = vmatpush.msrb.mxu0 %v285_v37  ;;  %365 = vmatpush.msrb.mxu1 %v319_v38 }
  0x47   :  { %386 = vmatpush.msrb.mxu2 %v286_v39  ;;  %406 = vmatpush.msrb.mxu3 %v318_v40  ;;  %v461_v40 = vlaneseq }
  0x48   :  { %347 = vmatpush.msrb.mxu0 %v283_v41  ;;  %366 = vmatpush.msrb.mxu1 %v317_v42 }
  0x49   :  { %387 = vmatpush.msrb.mxu2 %v284_v43  ;;  %407 = vmatpush.msrb.mxu3 %v316_v44  ;;  %vm696_vm5 = vcmp.lt.s32.totalorder %v461_v40, 256 }
  0x4a   :  { %348 = vmatpush.msrb.mxu0 %v281_v45  ;;  %367 = vmatpush.msrb.mxu1 %v315_v46 }
  0x4b   :  { %388 = vmatpush.msrb.mxu2 %v282_v47  ;;  %408 = vmatpush.msrb.mxu3 %v314_v51 }
  0x4c   :  { %349 = vmatpush.msrb.mxu0 %v279_v48  ;;  %368 = vmatpush.msrb.mxu1 %v313_v49 }
  0x4d   :  { %389 = vmatpush.msrb.mxu2 %v280_v50  ;;  %409 = vmatpush.msrb.mxu3 %v312_v55 }
  0x4e   :  { %350 = vmatpush.msrb.mxu0 %v277_v52  ;;  %369 = vmatpush.msrb.mxu1 %v311_v53 }
  0x4f   :  { %390 = vmatpush.msrb.mxu2 %v278_v54  ;;  %410 = vmatpush.msrb.mxu3 %v310_v59 }
  0x50   :  { %351 = vmatpush.msrb.mxu0 %v275_v56  ;;  %370 = vmatpush.msrb.mxu1 %v309_v57 }
  0x51   :  { %391 = vmatpush.msrb.mxu2 %v276_v58  ;;  %411 = vmatpush.msrb.mxu3 %v308_v63 }
  0x52   :  { %352 = vmatpush.msrb.mxu0 %v273_v60  ;;  %371 = vmatpush.msrb.mxu1 %v307_v61 }
  0x53   :  { %392 = vmatpush.msrb.mxu2 %v274_v62  ;;  %412 = vmatpush.msrb.mxu3 %v306_v3 }
  0x54   :  { %353 = vmatpush.msrb.mxu0 %v271_v0  ;;  %372 = vmatpush.msrb.mxu1 %v305_v1 }
  0x55   :  { %393 = vmatpush.msrb.mxu2 %v272_v2  ;;  %413 = vmatpush.msrb.mxu3 %v304_v7 }
  0x56   :  { %354 = vmatpush.msrb.mxu0 %v269_v4  ;;  %373 = vmatpush.msrb.mxu1 %v303_v5 }
  0x57   :  { %394 = vmatpush.msrb.mxu2 %v270_v6  ;;  %414 = vmatpush.msrb.mxu3 %v302_v9 }
  0x58   :  { %374 = vmatpush.msrb.mxu1 %v301_v8 }
  0xb8   :  { %v204_v12 = vpop.f32.mrf.mxu0  ;;  %v224_v13 = vpop.f32.mrf.mxu1 }
  0xb9   :  { %v205_v14 = vadd.f32 %v204_v12, %v156_v11 }
  0xbb   :  { %v225_v16 = vadd.f32 %v224_v13, %v205_v14 }
  0xbd   :  { %503 = vtanh.f32 %v225_v16  ;;  %v244_v17 = vpop.f32.mrf.mxu2  ;;  %v264_v18 = vpop.f32.mrf.mxu3 }
  0xbe   :  { %v245_v19 = vadd.f32 %v244_v17, %v157_v15 }
  0xc0   :  { %v265_v20 = vadd.f32 %v264_v18, %v245_v19 }
  0xc2   :  { %505 = vtanh.f32 %v265_v20 }
  0xc3   :  { %v504_v21 = vpop.eup %503 }
  0xc4   :  { %355 = vmatmul.f32.vlgmr.msrb.gmra.mxu0 %v504_v21  ;;  %395 = vmatmul.f32.vlgmr.msrb.gmra.mxu2 %v504_v21 }
  0xc8   :  { %v506_v22 = vpop.eup %505 }
  0xc9   :  { %375 = vmatmul.f32.vlgmr.msrb.gmra.mxu1 %v506_v22  ;;  %415 = vmatmul.f32.vlgmr.msrb.gmra.mxu3 %v506_v22 }
 0x141   :  { %v356_v25 = vpop.f32.mrf.mxu0 }
 0x142   :  { %v357_v26 = vadd.f32 %v356_v25, %v335_v24 }
 0x146   :  { %v376_v28 = vpop.f32.mrf.mxu1 }
 0x147   :  { %v377_v29 = vadd.f32 %v376_v28, %v357_v26  ;;  %v396_v30 = vpop.f32.mrf.mxu2 }
 0x148   :  { %v397_v31 = vadd.f32 %v396_v30, %v336_v27 }
 0x149   :  { %v419_v32 = vmul.f32 0.5, %v377_v29 }
 0x14b   :  { %507 = vtanh.f32 %v419_v32 }
 0x14c   :  { %v416_v33 = vpop.f32.mrf.mxu3 }
 0x14d   :  { %v417_v34 = vadd.f32 %v416_v33, %v397_v31 }
 0x14f   :  { %v420_v35 = vmul.f32 0.5, %v417_v34 }
 0x151   :  { %509 = vtanh.f32 %v420_v35  ;;  %v508_v36 = vpop.eup %507 }
 0x152   :  { %v423_v38 = vadd.f32 1.0, %v508_v36 }
 0x154   :  { %v425_v42 = vmul.f32 0.5, %v423_v38 }
 0x157   :  { %v510_v37 = vpop.eup %509 }
 0x158   :  { %v424_v39 = vadd.f32 1.0, %v510_v37 }
 0x15a   :  { %v426_v41 = vmul.f32 0.5, %v424_v39 }
 0x15c   :  { %v429_v43 = vrot.slane %v426_v41, 7 }
 0x15e   :  { %v431_v45 = vsel %vm430_vm0, %v425_v42, %v429_v43  ;;  %v433_v46 = vsel %vm432_vm1, %v425_v42, %v429_v43  ;;  %v436_v47 = vsel %vm435_vm2, %v425_v42, %v429_v43  ;;  %v439_v48 = vsel %vm438_vm3, %v425_v42, %v429_v43 }
 0x15f   :  { %v434_v49 = vrot.slane %v433_v46, 1  ;;  %v437_v50 = vrot.slane %v436_v47, 2  ;;  %v440_v51 = vrot.slane %v439_v48, 3  ;;  %v442_v52 = vsel %vm441_vm4, %v425_v42, %v429_v43  ;;  %465 = vst.msk [vmem:[#allocation10] sm:$0x3] %vm696_vm5, %v431_v45 }
 0x160   :  { %v443_v53 = vrot.slane %v442_v52, 4  ;;  %v445_v54 = vsel %vm444_vm6, %v425_v42, %v429_v43  ;;  %v448_v55 = vsel %vm447_vm7, %v425_v42, %v429_v43  ;;  %v451_v56 = vsel %vm450_vm8, %v429_v43, %v425_v42 }
 0x161   :  { %v446_v57 = vrot.slane %v445_v54, 5  ;;  %466 = vst.msk [vmem:[#allocation10 + $0x2] sm:$0x3] %vm696_vm5, %v434_v49  ;;  %v449_v58 = vrot.slane %v448_v55, 6  ;;  %v452_v59 = vrot.slane %v451_v56, 7 }
 0x162   :  { %467 = vst.msk [vmem:[#allocation10 + $0x4] sm:$0x3] %vm696_vm5, %v437_v50 }
 0x163   :  { %468 = vst.msk [vmem:[#allocation10 + $0x6] sm:$0x3] %vm696_vm5, %v440_v51 }
 0x164   :  { %469 = vst.msk [vmem:[#allocation10 + $0x8] sm:$0x3] %vm696_vm5, %v443_v53 }
 0x165   :  { %470 = vst.msk [vmem:[#allocation10 + $0xa] sm:$0x3] %vm696_vm5, %v446_v57 }
 0x166   :  { %471 = vst.msk [vmem:[#allocation10 + $0xc] sm:$0x3] %vm696_vm5, %v449_v58 }
 0x167   :  { %472 = vst.msk [vmem:[#allocation10 + $0xe] sm:$0x3] %vm696_vm5, %v452_v59 }
 0x168   :  { %476 = vsyncadd [#allocation4], 224  ;;  %s479_s16 = sshll.u32 %s727_s5, 4  ;;  %s647_s17 = smov [#allocation10]   ;;  %s480_s16 = int_to_ptr.hbm [resolvable:$true] %s479_s16 }
 0x169   :  { %s477_s18 = sshll.u32 %s647_s17, 4  ;;  %s478_s18 = int_to_ptr.vmem [resolvable:$true] %s477_s18 }
 0x16a   :  { %485 = dma.vmem_to_hbm [thread:$0]  %s478_s18, 32, %s480_s16, [#allocation4], %s643_s30, %s643_s30, %s644_s6  }
 0x16b   :  { %637 = dma.done.wait [#allocation4], 256  }
 0x16c   :  { %638 = vsyncadd [#allocation4], 4294967040 }
 0x16d   :  { %490 = vsyncpa [#allocation3], 1 }
 0x16e   :  { %491 = vsyncpa [#allocation6], 1 }
 0x16f   :  { %492 = vsyncpa [#allocation9], 1 }
 0x170   :  { %493 = vsyncpa [#allocation4], 1 }

</bundles_post_ra>
